<compile_context>
chip_gen: v7x
topology: tpu7x:2x2x1
jax: 0.10.0
libtpu: 0.0.40
codegen_flags: <defaults>
</compile_context>

<pallas_src>
import functools

import jax
import jax.numpy as jnp
from jax.experimental import pallas as pl
from jax.experimental.pallas import tpu as pltpu


# ---------------------------------------------------------------------------
# Counter-based hash (murmur3 fmix32) in pure int32 ops.
# ---------------------------------------------------------------------------
def _to_i32(v: int) -> int:
    v &= 0xFFFFFFFF
    return v - (1 << 32) if v >= (1 << 31) else v


_FMIX_C1 = _to_i32(0x85EBCA6B)
_FMIX_C2 = _to_i32(0xC2B2AE35)
_GOLDEN = _to_i32(0x9E3779B9)
_SIGN_BIT = _to_i32(0x80000000)


def _lsr32(h, k: int):
    # Logical right shift on int32: arithmetic shift + mask off sign-extension.
    return (h >> k) & jnp.int32((1 << (32 - k)) - 1)


def _fmix32(h):
    h = h ^ _lsr32(h, 16)
    h = h * jnp.int32(_FMIX_C1)
    h = h ^ _lsr32(h, 13)
    h = h * jnp.int32(_FMIX_C2)
    h = h ^ _lsr32(h, 16)
    return h


def _drop_threshold_biased(drop_prob: float) -> int:
    # uint32 threshold for "drop" (hash <u thresh), pre-biased so the compare
    # can be done as a signed int32 compare: a <u b  <=>  (a^MSB) <s (b^MSB).
    t = int(round(float(drop_prob) * 4294967296.0))
    t = max(0, min(t, 4294967295))
    return _to_i32(t ^ 0x80000000)


# ---------------------------------------------------------------------------
# Kernel
# ---------------------------------------------------------------------------
def _stable_dropout_kernel(seed_ref, x_ref, o_ref, *,
                           drop_prob: float, block_rows: int, lanes: int):
    x = x_ref[...]
    shape = x.shape

    # Global flat element index of every element in this block (grid-invariant).
    row0 = pl.program_id(0) * block_rows
    rows_iota = jax.lax.broadcasted_iota(jnp.int32, shape, 0)
    cols_iota = jax.lax.broadcasted_iota(jnp.int32, shape, 1)
    idx = (rows_iota + row0) * lanes + cols_iota

    # Mix seed into the counter and hash -> 32 uniform-ish bits per element.
    seed_mixed = seed_ref[0] * jnp.int32(_GOLDEN)
    h = _fmix32(idx ^ seed_mixed)

    # drop with probability drop_prob: unsigned compare via sign-bit bias.
    drop = (h ^ jnp.int32(_SIGN_BIT)) < jnp.int32(_drop_threshold_biased(drop_prob))

    scale = jnp.asarray(1.0 / (1.0 - drop_prob), dtype=x.dtype)
    out = jnp.where(drop, jnp.zeros_like(x), x) * scale
    o_ref[...] = out.astype(o_ref.dtype)


# ---------------------------------------------------------------------------
# Wrapper
# ---------------------------------------------------------------------------
def stable_dropout(x, *, drop_prob: float, seed: int, training: bool = True,
                   target_block_bytes: int = 2 << 20):
    """Forward of StableDropout. Identity when not training or drop_prob == 0."""
    if (not training) or drop_prob <= 0.0:
        return x

    orig_shape = x.shape
    total = x.size

    # Wide, lane-dense last dimension (multiple of 128).
    lanes = None
    for cand in (2048, 1024, 512, 256, 128):
        if total % cand == 0:
            lanes = cand
            break
    assert lanes is not None, "flat size must be a multiple of 128 for this kernel"
    rows = total // lanes

    # Large tiles (~target_block_bytes each): 2 arrays x 2 pipeline buffers of
    # this size stays under the scoped-VMEM defaults on v5e/v6e/v7x.
    itemsize = jnp.dtype(x.dtype).itemsize
    rows_per_block = max(1, target_block_bytes // (lanes * itemsize))
    if rows <= rows_per_block:
        block_rows = rows                         # full extent -> always legal
    else:
        block_rows = max(8, (rows_per_block // 8) * 8)   # multiple of 8
    grid = pl.cdiv(rows, block_rows)

    x2d = x.reshape(rows, lanes)
    seed_arr = jnp.asarray([seed], dtype=jnp.int32)

    kernel = functools.partial(_stable_dropout_kernel,
                               drop_prob=float(drop_prob),
                               block_rows=block_rows, lanes=lanes)

    out2d = pl.pallas_call(
        kernel,
        out_shape=jax.ShapeDtypeStruct((rows, lanes), x.dtype),
        grid_spec=pltpu.PrefetchScalarGridSpec(
            num_scalar_prefetch=1,
            grid=(grid,),
            in_specs=[pl.BlockSpec((block_rows, lanes), lambda i, seed: (i, 0))],
            out_specs=pl.BlockSpec((block_rows, lanes), lambda i, seed: (i, 0)),
        ),
        compiler_params=pltpu.CompilerParams(
            dimension_semantics=("parallel",)),
    )(seed_arr, x2d)

    return out2d.reshape(orig_shape)


# ---------------------------------------------------------------------------
# Self-test
# ---------------------------------------------------------------------------
if __name__ == "__main__":
    key = jax.random.PRNGKey(0)
    # NCHW-like input: batch=2, channels=4, spatial=16x16 (flat size 2048)
    x = jax.random.normal(key, (2, 4, 16, 16), dtype=jnp.float32)

    drop_prob = 0.1
    seed = 1234

    # Training-mode dropout (the Pallas hot path).
    y = stable_dropout(x, drop_prob=drop_prob, seed=seed, training=True)
    y = jax.block_until_ready(y)

    # Pure-JAX reference of the exact same hash-based mask (grid-invariant,
    # so it does not depend on the kernel's tiling).
    total = x.size
    idx = jnp.arange(total, dtype=jnp.int32)
    h = _fmix32(idx ^ (jnp.int32(seed) * jnp.int32(_GOLDEN)))
    drop = (h ^ jnp.int32(_SIGN_BIT)) < jnp.int32(_drop_threshold_biased(drop_prob))
    scale = jnp.float32(1.0 / (1.0 - drop_prob))
    y_ref = (jnp.where(drop, jnp.float32(0.0), x.reshape(-1)) * scale).reshape(x.shape)
    assert bool(jnp.array_equal(y, y_ref)), "kernel output mismatch vs reference"

    # Drop fraction sanity (statistical).
    drop_frac = float(jnp.mean(drop.astype(jnp.float32)))
    assert abs(drop_frac - drop_prob) < 0.05, f"drop fraction {drop_frac} far from {drop_prob}"

    # Eval mode / p==0 -> identity (matches StableDropout.forward fall-through).
    y_eval = stable_dropout(x, drop_prob=drop_prob, seed=seed, training=False)
    assert bool(jnp.array_equal(y_eval, x))

    print("KERNEL_OK")
</pallas_src>

<mosaic_0001>
module attributes {stable_mosaic.version = 11 : i64} {
  func.func @_stable_dropout_kernel(%arg0: i32, %arg1: memref<1xi32, #tpu.memory_space<smem>>, %arg2: memref<1x2048xf32, #tpu.memory_space<vmem>>, %arg3: memref<1x2048xf32, #tpu.memory_space<vmem>>) attributes {dimension_semantics = [#tpu.dimension_semantics<parallel>], iteration_bounds = array<i64: 1>, scalar_prefetch = 1 : i64, scratch_operands = 0 : i64, tpu.core_type = #tpu.core_type<tc>, window_params = [{transform_indices = @transform_0, window_bounds = array<i64: 1, 2048>}, {transform_indices = @transform_1, window_bounds = array<i64: 1, 2048>}]} {
    %c0 = arith.constant 0 : index
    %c0_0 = arith.constant 0 : index
    %0 = vector.load %arg2[%c0, %c0_0] : memref<1x2048xf32, #tpu.memory_space<vmem>>, vector<1x2048xf32>
    %c1_i32 = arith.constant 1 : i32
    %1 = arith.muli %arg0, %c1_i32 : i32
    %2 = tpu.iota {dimensions = array<i32: 0>} : vector<1x2048xi32>
    %3 = tpu.iota {dimensions = array<i32: 1>} : vector<1x2048xi32>
    %4 = vector.broadcast %1 : i32 to vector<1x2048xi32>
    %5 = arith.addi %2, %4 : vector<1x2048xi32>
    %c2048_i32 = arith.constant 2048 : i32
    %6 = vector.broadcast %c2048_i32 : i32 to vector<1x2048xi32>
    %7 = arith.muli %5, %6 : vector<1x2048xi32>
    %8 = arith.addi %7, %3 : vector<1x2048xi32>
    %c0_1 = arith.constant 0 : index
    %9 = memref.load %arg1[%c0_1] : memref<1xi32, #tpu.memory_space<smem>>
    %c-1640531527_i32 = arith.constant -1640531527 : i32
    %10 = arith.muli %9, %c-1640531527_i32 : i32
    %11 = vector.broadcast %10 : i32 to vector<1x2048xi32>
    %12 = arith.xori %8, %11 : vector<1x2048xi32>
    %c16_i32 = arith.constant 16 : i32
    %13 = vector.broadcast %c16_i32 : i32 to vector<1x2048xi32>
    %14 = arith.shrsi %12, %13 : vector<1x2048xi32>
    %c65535_i32 = arith.constant 65535 : i32
    %15 = vector.broadcast %c65535_i32 : i32 to vector<1x2048xi32>
    %16 = arith.andi %14, %15 : vector<1x2048xi32>
    %17 = arith.xori %12, %16 : vector<1x2048xi32>
    %c-2048144789_i32 = arith.constant -2048144789 : i32
    %18 = vector.broadcast %c-2048144789_i32 : i32 to vector<1x2048xi32>
    %19 = arith.muli %17, %18 : vector<1x2048xi32>
    %c13_i32 = arith.constant 13 : i32
    %20 = vector.broadcast %c13_i32 : i32 to vector<1x2048xi32>
    %21 = arith.shrsi %19, %20 : vector<1x2048xi32>
    %c524287_i32 = arith.constant 524287 : i32
    %22 = vector.broadcast %c524287_i32 : i32 to vector<1x2048xi32>
    %23 = arith.andi %21, %22 : vector<1x2048xi32>
    %24 = arith.xori %19, %23 : vector<1x2048xi32>
    %c-1028477387_i32 = arith.constant -1028477387 : i32
    %25 = vector.broadcast %c-1028477387_i32 : i32 to vector<1x2048xi32>
    %26 = arith.muli %24, %25 : vector<1x2048xi32>
    %c16_i32_2 = arith.constant 16 : i32
    %27 = vector.broadcast %c16_i32_2 : i32 to vector<1x2048xi32>
    %28 = arith.shrsi %26, %27 : vector<1x2048xi32>
    %c65535_i32_3 = arith.constant 65535 : i32
    %29 = vector.broadcast %c65535_i32_3 : i32 to vector<1x2048xi32>
    %30 = arith.andi %28, %29 : vector<1x2048xi32>
    %31 = arith.xori %26, %30 : vector<1x2048xi32>
    %c-2147483648_i32 = arith.constant -2147483648 : i32
    %32 = vector.broadcast %c-2147483648_i32 : i32 to vector<1x2048xi32>
    %33 = arith.xori %31, %32 : vector<1x2048xi32>
    %c-1717986918_i32 = arith.constant -1717986918 : i32
    %34 = vector.broadcast %c-1717986918_i32 : i32 to vector<1x2048xi32>
    %35 = arith.cmpi slt, %33, %34 : vector<1x2048xi32>
    %cst = arith.constant 0.000000e+00 : f32
    %36 = vector.broadcast %cst : f32 to vector<1x2048xf32>
    %37 = arith.select %35, %36, %0 : vector<1x2048xi1>, vector<1x2048xf32>
    %cst_4 = arith.constant 1.11111116 : f32
    %38 = vector.broadcast %cst_4 : f32 to vector<1x2048xf32>
    %39 = arith.mulf %37, %38 : vector<1x2048xf32>
    %c0_5 = arith.constant 0 : index
    %c0_6 = arith.constant 0 : index
    %40 = vector.load %arg3[%c0_5, %c0_6] : memref<1x2048xf32, #tpu.memory_space<vmem>>, vector<1x2048xf32>
    tpu.vector_store %arg3[%c0_5, %c0_6], %39 {strides = array<i32>} : memref<1x2048xf32, #tpu.memory_space<vmem>>, vector<1x2048xf32>,
    return
  }
  func.func @transform_0(%arg0: i32, %arg1: memref<1xi32, #tpu.memory_space<smem>>) -> (i32, i32) {
    %c0_i32 = arith.constant 0 : i32
    %c0_i32_0 = arith.constant 0 : i32
    return %arg0, %c0_i32 : i32, i32
  }
  func.func @transform_1(%arg0: i32, %arg1: memref<1xi32, #tpu.memory_space<smem>>) -> (i32, i32) {
    %c0_i32 = arith.constant 0 : i32
    %c0_i32_0 = arith.constant 0 : i32
    return %arg0, %c0_i32 : i32, i32
  }
}

</mosaic_0001>

<bundles_post_ra>
// kernel: tpu_custom_call.1
= control target key start
LH: loop header
LB: loop body
LE: loop exit
PB: predicated region body
PF: predicated region fallthrough
CT: control target
= control target key end

     0   :  { %8 = vsyncpa [#allocation5], 0  ;;  %s848_s0 = inlined_call_operand.<no memory space> [shape: s32[1], index: 0, kind: input, shape index: {}]   ;;  %s849_s1 = inlined_call_operand.hbm [shape: f32[1,2048], index: 1, kind: input, shape index: {}]   ;;  %s850_s2 = inlined_call_operand.hbm [shape: f32[1,2048], index: 2, kind: output, shape index: {}]  }
   0x1   :  { %9 = vsyncpa [#allocation6], 0  ;;  %s636_s9 = smov [#allocation4]   ;;  %s588_s13 = scalar_lea.hbm %s849_s1, 256 }
   0x2   :  { %s16_s10 = sshll.u32 %s636_s9, 4  ;;  %p589_p0 = scmp.ne.s32.totalorder %s849_s1, %s588_s13  ;;  %s17_s10 = int_to_ptr.vmem [resolvable:$true] %s16_s10 }
   0x3   :  { %p592_p1 = scmp.lt.u32.totalorder %s588_s13, %s849_s1 }
   0x5   :  { %p594_p2 = pnand %p592_p1, %p589_p0 }
   0x7   :  { %597 = shalt.err (!%p594_p2)
}
   0x8   :  { %s598_s18 = scalar_lea.vmem %s17_s10, 256  ;;  %p603_p4 = scmp.lt.s32.totalorder %s17_s10, %s17_s10 }
   0x9   :  { %p599_p3 = scmp.ne.s32.totalorder %s17_s10, %s598_s18  ;;  %p604_p5 = scmp.lt.s32.totalorder %s598_s18, %s598_s18 }
   0xb   :  { %p605_p6 = por %p604_p5, %p603_p4 }
   0xd   :  { %p606_p7 = pnand %p605_p6, %p599_p3 }
   0xf   :  { %609 = shalt.err (!%p606_p7)
}
  0x10   :  { %19 = dma.hbm_to_vmem [thread:$0]  %s849_s1, 256, %s17_s10, [#allocation5]  }
  0x11   :  { %632 = dma.done.wait [#allocation5], 256  }
  0x12   :  { %633 = vsyncadd [#allocation5], 4294967040  ;;  %v25_v0 = vlaneseq  ;;  %s64_s23 = smul.u32 2654435769, %s848_s0  ;;  %v637_v1 = vmov 1966171168  }
  0x13   :  { %v669_v2 = vunpack.c.l.s4 %v637_v1  ;;  %s638_s0 = smov [#allocation7]  }
  0x14   :  { %v28_v3 = vand.u32 127, %v25_v0  ;;  %v671_v4 = vshrl.u32 %v25_v0, 7  ;;  %v65_v5 = vstv %s64_s23  ;;  %s528_s1 = sshll.u32 %s638_s0, 4  ;;  %s529_s1 = int_to_ptr.vmem [resolvable:$true] %s528_s1 }
  0x15   :  { %s610_s24 = scalar_lea.vmem %s529_s1, 256  ;;  %p615_p9 = scmp.lt.s32.totalorder %s529_s1, %s529_s1 }
  0x16   :  { %v29_v7 = vadd.s32 128, %v28_v3  ;;  %v30_v8 = vadd.s32 256, %v28_v3  ;;  %v31_v9 = vadd.s32 384, %v28_v3  ;;  %v32_v10 = vadd.s32 512, %v28_v3  ;;  %p611_p8 = scmp.ne.s32.totalorder %s529_s1, %s610_s24  ;;  %p616_p10 = scmp.lt.s32.totalorder %s610_s24, %s610_s24 }
  0x17   :  { %v33_v11 = vadd.s32 640, %v28_v3  ;;  %v34_v12 = vadd.s32 768, %v28_v3  ;;  %v35_v13 = vadd.s32 896, %v28_v3  ;;  %v36_v14 = vadd.s32 1024, %v28_v3 }
  0x18   :  { %v37_v15 = vadd.s32 1152, %v28_v3  ;;  %v38_v16 = vadd.s32 1280, %v28_v3  ;;  %v39_v17 = vadd.s32 1408, %v28_v3  ;;  %v40_v18 = vadd.s32 1536, %v28_v3  ;;  %p617_p11 = por %p616_p10, %p615_p9 }
  0x19   :  { %v41_v19 = vadd.s32 1664, %v28_v3  ;;  %v42_v20 = vadd.s32 1792, %v28_v3  ;;  %v43_v21 = vadd.s32 1920, %v28_v3  ;;  %v46_v22 = vmul.u32 2048, %v671_v4 }
  0x1a   :  { %v294_v23 = vsub.s32 0, %v671_v4  ;;  %v298_v24 = vsub.s32 1, %v671_v4  ;;  %v302_v25 = vsub.s32 2, %v671_v4  ;;  %v851_v26 = vsub.s32 3, %v671_v4  ;;  %p618_p12 = pnand %p617_p11, %p611_p8 }
  0x1b   :  { %v47_v27 = vadd.s32 %v46_v22, %v28_v3  ;;  %v48_v28 = vadd.s32 %v46_v22, %v29_v7  ;;  %v49_v29 = vadd.s32 %v46_v22, %v30_v8  ;;  %v50_v30 = vadd.s32 %v46_v22, %v31_v9 }
  0x1c   :  { %v51_v31 = vadd.s32 %v46_v22, %v32_v10  ;;  %v52_v32 = vadd.s32 %v46_v22, %v33_v11  ;;  %v53_v33 = vadd.s32 %v46_v22, %v34_v12  ;;  %v54_v34 = vadd.s32 %v46_v22, %v35_v13 }
  0x1d   :  { %v55_v35 = vadd.s32 %v46_v22, %v36_v14  ;;  %v56_v36 = vadd.s32 %v46_v22, %v37_v15  ;;  %v57_v37 = vadd.s32 %v46_v22, %v38_v16  ;;  %v58_v38 = vadd.s32 %v46_v22, %v39_v17 }
  0x1e   :  { %v59_v39 = vadd.s32 %v46_v22, %v40_v18  ;;  %v60_v40 = vadd.s32 %v46_v22, %v41_v19  ;;  %v61_v41 = vadd.s32 %v46_v22, %v42_v20  ;;  %v62_v42 = vadd.s32 %v46_v22, %v43_v21  ;;  %v679_v18 = vld [vmem:[#allocation4] sm:$0xff] }
  0x1f   :  { %v66_v43 = vxor.u32 %v65_v5, %v47_v27  ;;  %v67_v44 = vxor.u32 %v65_v5, %v48_v28  ;;  %v68_v45 = vxor.u32 %v65_v5, %v49_v29  ;;  %v69_v46 = vxor.u32 %v65_v5, %v50_v30 }
  0x20   :  { %v70_v47 = vxor.u32 %v65_v5, %v51_v31  ;;  %v71_v48 = vxor.u32 %v65_v5, %v52_v32  ;;  %v72_v49 = vxor.u32 %v65_v5, %v53_v33  ;;  %v73_v50 = vxor.u32 %v65_v5, %v54_v34 }
  0x21   :  { %v74_v51 = vxor.u32 %v65_v5, %v55_v35  ;;  %v75_v52 = vxor.u32 %v65_v5, %v56_v36  ;;  %v76_v53 = vxor.u32 %v65_v5, %v57_v37  ;;  %v77_v54 = vxor.u32 %v65_v5, %v58_v38 }
  0x22   :  { %v78_v55 = vxor.u32 %v65_v5, %v59_v39  ;;  %v79_v56 = vxor.u32 %v65_v5, %v60_v40  ;;  %v80_v57 = vxor.u32 %v65_v5, %v61_v41  ;;  %v81_v58 = vxor.u32 %v65_v5, %v62_v42 }
  0x23   :  { %v537_v59 = vshrl.u32 %v66_v43, 16  ;;  %v538_v60 = vshrl.u32 %v67_v44, 16  ;;  %v539_v61 = vshrl.u32 %v68_v45, 16  ;;  %v540_v62 = vshrl.u32 %v69_v46, 16 }
  0x24   :  { %v541_v63 = vshrl.u32 %v70_v47, 16  ;;  %v542_v0 = vshrl.u32 %v71_v48, 16  ;;  %v543_v1 = vshrl.u32 %v72_v49, 16  ;;  %v544_v3 = vshrl.u32 %v73_v50, 16 }
  0x25   :  { %v545_v7 = vshrl.u32 %v74_v51, 16  ;;  %v546_v8 = vshrl.u32 %v75_v52, 16  ;;  %v547_v9 = vshrl.u32 %v76_v53, 16  ;;  %v548_v10 = vshrl.u32 %v77_v54, 16 }
  0x26   :  { %v549_v11 = vshrl.u32 %v78_v55, 16  ;;  %v550_v12 = vshrl.u32 %v79_v56, 16  ;;  %v551_v13 = vshrl.u32 %v80_v57, 16  ;;  %v552_v14 = vshrl.u32 %v81_v58, 16 }
  0x27   :  { %v114_v15 = vxor.u32 %v537_v59, %v66_v43  ;;  %v115_v16 = vxor.u32 %v538_v60, %v67_v44  ;;  %v116_v17 = vxor.u32 %v539_v61, %v68_v45  ;;  %v117_v5 = vxor.u32 %v540_v62, %v69_v46 }
  0x28   :  { %v118_v19 = vxor.u32 %v541_v63, %v70_v47  ;;  %v119_v20 = vxor.u32 %v542_v0, %v71_v48  ;;  %v120_v21 = vxor.u32 %v543_v1, %v72_v49  ;;  %v121_v22 = vxor.u32 %v544_v3, %v73_v50 }
  0x29   :  { %v122_v27 = vxor.u32 %v545_v7, %v74_v51  ;;  %v123_v28 = vxor.u32 %v546_v8, %v75_v52  ;;  %v124_v29 = vxor.u32 %v547_v9, %v76_v53  ;;  %v125_v30 = vxor.u32 %v548_v10, %v77_v54 }
  0x2a   :  { %v126_v31 = vxor.u32 %v549_v11, %v78_v55  ;;  %v127_v32 = vxor.u32 %v550_v12, %v79_v56  ;;  %v128_v33 = vxor.u32 %v551_v13, %v80_v57  ;;  %v129_v34 = vxor.u32 %v552_v14, %v81_v58 }
  0x2b   :  { %v130_v35 = vmul.u32 2246822507, %v114_v15  ;;  %v131_v36 = vmul.u32 2246822507, %v115_v16  ;;  %v684_v37 = vrot.slane %v679_v18, %v294_v23  ;;  %v689_v38 = vrot.slane %v679_v18, %v298_v24 }
  0x2c   :  { %v132_v39 = vmul.u32 2246822507, %v116_v17  ;;  %v133_v40 = vmul.u32 2246822507, %v117_v5  ;;  %v694_v41 = vrot.slane %v679_v18, %v302_v25  ;;  %v699_v42 = vrot.slane %v679_v18, %v851_v26 }
  0x2d   :  { %v134_v43 = vmul.u32 2246822507, %v118_v19  ;;  %v135_v44 = vmul.u32 2246822507, %v119_v20  ;;  %v553_v45 = vshrl.u32 %v130_v35, 13  ;;  %v554_v46 = vshrl.u32 %v131_v36, 13 }
  0x2e   :  { %v136_v47 = vmul.u32 2246822507, %v120_v21  ;;  %v137_v48 = vmul.u32 2246822507, %v121_v22  ;;  %v555_v49 = vshrl.u32 %v132_v39, 13  ;;  %v556_v50 = vshrl.u32 %v133_v40, 13 }
  0x2f   :  { %v138_v51 = vmul.u32 2246822507, %v122_v27  ;;  %v139_v52 = vmul.u32 2246822507, %v123_v28  ;;  %v557_v53 = vshrl.u32 %v134_v43, 13  ;;  %v558_v54 = vshrl.u32 %v135_v44, 13 }
  0x30   :  { %v140_v55 = vmul.u32 2246822507, %v124_v29  ;;  %v141_v56 = vmul.u32 2246822507, %v125_v30  ;;  %v559_v57 = vshrl.u32 %v136_v47, 13  ;;  %v560_v58 = vshrl.u32 %v137_v48, 13 }
  0x31   :  { %v142_v59 = vmul.u32 2246822507, %v126_v31  ;;  %v143_v60 = vmul.u32 2246822507, %v127_v32  ;;  %v561_v61 = vshrl.u32 %v138_v51, 13  ;;  %v562_v62 = vshrl.u32 %v139_v52, 13 }
  0x32   :  { %v144_v63 = vmul.u32 2246822507, %v128_v33  ;;  %v145_v0 = vmul.u32 2246822507, %v129_v34  ;;  %v563_v1 = vshrl.u32 %v140_v55, 13  ;;  %v564_v3 = vshrl.u32 %v141_v56, 13 }
  0x33   :  { %v565_v7 = vshrl.u32 %v142_v59, 13  ;;  %v566_v8 = vshrl.u32 %v143_v60, 13  ;;  %v178_v9 = vxor.u32 %v553_v45, %v130_v35  ;;  %v179_v10 = vxor.u32 %v554_v46, %v131_v36 }
  0x34   :  { %v567_v11 = vshrl.u32 %v144_v63, 13  ;;  %v568_v12 = vshrl.u32 %v145_v0, 13  ;;  %v180_v13 = vxor.u32 %v555_v49, %v132_v39  ;;  %v181_v14 = vxor.u32 %v556_v50, %v133_v40 }
  0x35   :  { %v182_v15 = vxor.u32 %v557_v53, %v134_v43  ;;  %v183_v16 = vxor.u32 %v558_v54, %v135_v44  ;;  %v184_v17 = vxor.u32 %v559_v57, %v136_v47  ;;  %v185_v5 = vxor.u32 %v560_v58, %v137_v48 }
  0x36   :  { %v186_v19 = vxor.u32 %v561_v61, %v138_v51  ;;  %v187_v20 = vxor.u32 %v562_v62, %v139_v52  ;;  %v188_v21 = vxor.u32 %v563_v1, %v140_v55  ;;  %v189_v22 = vxor.u32 %v564_v3, %v141_v56 }
  0x37   :  { %v190_v27 = vxor.u32 %v565_v7, %v142_v59  ;;  %v191_v28 = vxor.u32 %v566_v8, %v143_v60  ;;  %v192_v29 = vxor.u32 %v567_v11, %v144_v63  ;;  %v193_v30 = vxor.u32 %v568_v12, %v145_v0 }
  0x38   :  { %v194_v31 = vmul.u32 3266489909, %v178_v9  ;;  %v195_v32 = vmul.u32 3266489909, %v179_v10  ;;  %v310_v33 = vsub.s32 4, %v671_v4  ;;  %v314_v34 = vsub.s32 5, %v671_v4 }
  0x39   :  { %v196_v35 = vmul.u32 3266489909, %v180_v13  ;;  %v197_v36 = vmul.u32 3266489909, %v181_v14  ;;  %v318_v39 = vsub.s32 6, %v671_v4  ;;  %v322_v40 = vsub.s32 7, %v671_v4 }
  0x3a   :  { %v198_v43 = vmul.u32 3266489909, %v182_v15  ;;  %v199_v44 = vmul.u32 3266489909, %v183_v16  ;;  %v569_v45 = vshrl.u32 %v194_v31, 16  ;;  %v570_v46 = vshrl.u32 %v195_v32, 16 }
  0x3b   :  { %v200_v47 = vmul.u32 3266489909, %v184_v17  ;;  %v201_v48 = vmul.u32 3266489909, %v185_v5  ;;  %v571_v49 = vshrl.u32 %v196_v35, 16  ;;  %v572_v50 = vshrl.u32 %v197_v36, 16 }
  0x3c   :  { %v202_v51 = vmul.u32 3266489909, %v186_v19  ;;  %v203_v52 = vmul.u32 3266489909, %v187_v20  ;;  %v573_v53 = vshrl.u32 %v198_v43, 16  ;;  %v574_v54 = vshrl.u32 %v199_v44, 16 }
  0x3d   :  { %v204_v55 = vmul.u32 3266489909, %v188_v21  ;;  %v205_v56 = vmul.u32 3266489909, %v189_v22  ;;  %v575_v57 = vshrl.u32 %v200_v47, 16  ;;  %v576_v58 = vshrl.u32 %v201_v48, 16 }
  0x3e   :  { %v206_v59 = vmul.u32 3266489909, %v190_v27  ;;  %v207_v60 = vmul.u32 3266489909, %v191_v28  ;;  %v577_v61 = vshrl.u32 %v202_v51, 16  ;;  %v578_v62 = vshrl.u32 %v203_v52, 16 }
  0x3f   :  { %v208_v63 = vmul.u32 3266489909, %v192_v29  ;;  %v209_v0 = vmul.u32 3266489909, %v193_v30  ;;  %v579_v1 = vshrl.u32 %v204_v55, 16  ;;  %v580_v3 = vshrl.u32 %v205_v56, 16 }
  0x40   :  { %v581_v7 = vshrl.u32 %v206_v59, 16  ;;  %v582_v8 = vshrl.u32 %v207_v60, 16  ;;  %v242_v9 = vxor.u32 %v569_v45, %v194_v31  ;;  %v243_v10 = vxor.u32 %v570_v46, %v195_v32 }
  0x41   :  { %v583_v11 = vshrl.u32 %v208_v63, 16  ;;  %v584_v12 = vshrl.u32 %v209_v0, 16  ;;  %v244_v13 = vxor.u32 %v571_v49, %v196_v35  ;;  %v245_v14 = vxor.u32 %v572_v50, %v197_v36  ;;  %v24_v49 = vld [vmem:[#allocation4 + $0x8] sm:$0xff] }
  0x42   :  { %v246_v15 = vxor.u32 %v573_v53, %v198_v43  ;;  %v247_v16 = vxor.u32 %v574_v54, %v199_v44  ;;  %v248_v17 = vxor.u32 %v575_v57, %v200_v47  ;;  %v249_v5 = vxor.u32 %v576_v58, %v201_v48 }
  0x43   :  { %v250_v19 = vxor.u32 %v577_v61, %v202_v51  ;;  %v251_v20 = vxor.u32 %v578_v62, %v203_v52  ;;  %v252_v21 = vxor.u32 %v579_v1, %v204_v55  ;;  %v253_v22 = vxor.u32 %v580_v3, %v205_v56 }
  0x44   :  { %v254_v27 = vxor.u32 %v581_v7, %v206_v59  ;;  %v255_v28 = vxor.u32 %v582_v8, %v207_v60  ;;  %v256_v29 = vxor.u32 %v583_v11, %v208_v63  ;;  %v257_v30 = vxor.u32 %v584_v12, %v209_v0 }
  0x45   :  { %v258_v6 = vxor.u32 2147483648, %v242_v9  ;;  %v259_v26 = vxor.u32 2147483648, %v243_v10  ;;  %v260_v31 = vxor.u32 2147483648, %v244_v13  ;;  %v261_v32 = vxor.u32 2147483648, %v245_v14 }
  0x46   :  { %v262_v45 = vxor.u32 2147483648, %v246_v15  ;;  %v263_v46 = vxor.u32 2147483648, %v247_v16  ;;  %v264_v35 = vxor.u32 2147483648, %v248_v17  ;;  %v265_v36 = vxor.u32 2147483648, %v249_v5 }
  0x47   :  { %v266_v43 = vxor.u32 2147483648, %v250_v19  ;;  %v267_v44 = vxor.u32 2147483648, %v251_v20  ;;  %v268_v47 = vxor.u32 2147483648, %v252_v21  ;;  %v269_v48 = vxor.u32 2147483648, %v253_v22 }
  0x48   :  { %v270_v50 = vxor.u32 2147483648, %v254_v27  ;;  %v271_v51 = vxor.u32 2147483648, %v255_v28  ;;  %v272_v52 = vxor.u32 2147483648, %v256_v29  ;;  %v273_v53 = vxor.u32 2147483648, %v257_v30 }
  0x49   :  { %vm705_vm0 = vcmp.lt.s32.totalorder %v258_v6, 2576980378  ;;  %vm709_vm1 = vcmp.lt.s32.totalorder %v259_v26, 2576980378  ;;  %vm713_vm2 = vcmp.lt.s32.totalorder %v260_v31, 2576980378  ;;  %v311_v57 = vrot.slane %v679_v18, %v310_v33 }
  0x4a   :  { %vm720_vm3 = vcmp.lt.s32.totalorder %v261_v32, 2576980378  ;;  %vm724_vm4 = vcmp.lt.s32.totalorder %v262_v45, 2576980378  ;;  %vm728_vm5 = vcmp.lt.s32.totalorder %v263_v46, 2576980378  ;;  %v315_v59 = vrot.slane %v679_v18, %v314_v34 }
  0x4b   :  { %vm735_vm6 = vcmp.lt.s32.totalorder %v264_v35, 2576980378  ;;  %vm739_vm7 = vcmp.lt.s32.totalorder %v265_v36, 2576980378  ;;  %vm743_vm8 = vcmp.lt.s32.totalorder %v266_v43, 2576980378  ;;  %v319_v63 = vrot.slane %v679_v18, %v318_v39 }
  0x4c   :  { %vm750_vm9 = vcmp.lt.s32.totalorder %v267_v44, 2576980378  ;;  %vm754_vm10 = vcmp.lt.s32.totalorder %v268_v47, 2576980378  ;;  %vm758_vm11 = vcmp.lt.s32.totalorder %v269_v48, 2576980378  ;;  %v323_v7 = vrot.slane %v679_v18, %v322_v40 }
  0x4d   :  { %vm765_vm12 = vcmp.lt.s32.totalorder %v270_v50, 2576980378  ;;  %vm769_vm13 = vcmp.lt.s32.totalorder %v271_v51, 2576980378  ;;  %vm773_vm14 = vcmp.lt.s32.totalorder %v272_v52, 2576980378  ;;  %v327_v11 = vrot.slane %v24_v49, %v294_v23 }
  0x4e   :  { %vm779_vm15 = vcmp.lt.s32.totalorder %v273_v53, 2576980378  ;;  %v331_v18 = vrot.slane %v24_v49, %v298_v24  ;;  %v335_v13 = vrot.slane %v24_v49, %v302_v25  ;;  %v884_v14 = vsub.s32 3, %v671_v4 }
  0x4f   :  { %v343_v16 = vrot.slane %v24_v49, %v310_v33  ;;  %v347_v17 = vrot.slane %v24_v49, %v314_v34  ;;  %v351_v23 = vrot.slane %v24_v49, %v318_v39  ;;  %v355_v5 = vrot.slane %v24_v49, %v322_v40 }
  0x50   :  { %v339_v15 = vrot.slane %v24_v49, %v884_v14  ;;  %v372_v24 = vsel %vm705_vm0, 0.0, %v684_v37  ;;  %v373_v25 = vsel %vm709_vm1, 0.0, %v689_v38  ;;  %v374_v33 = vsel %vm713_vm2, 0.0, %v694_v41 }
  0x51   :  { %v375_v34 = vsel %vm720_vm3, 0.0, %v699_v42  ;;  %v376_v39 = vsel %vm724_vm4, 0.0, %v311_v57  ;;  %v377_v40 = vsel %vm728_vm5, 0.0, %v315_v59  ;;  %v378_v37 = vsel %vm735_vm6, 0.0, %v319_v63 }
  0x52   :  { %v379_v38 = vsel %vm739_vm7, 0.0, %v323_v7  ;;  %v380_v19 = vsel %vm743_vm8, 0.0, %v327_v11  ;;  %v381_v41 = vsel %vm750_vm9, 0.0, %v331_v18  ;;  %v382_v42 = vsel %vm754_vm10, 0.0, %v335_v13 }
  0x53   :  { %v383_v20 = vsel %vm758_vm11, 0.0, %v339_v15  ;;  %v384_v21 = vsel %vm765_vm12, 0.0, %v343_v16  ;;  %v385_v22 = vsel %vm769_vm13, 0.0, %v347_v17  ;;  %v386_v27 = vsel %vm773_vm14, 0.0, %v351_v23 }
  0x54   :  { %v387_v28 = vsel %vm779_vm15, 0.0, %v355_v5  ;;  %v388_v29 = vmul.f32 1.1111112, %v372_v24  ;;  %v389_v30 = vmul.f32 1.1111112, %v373_v25  ;;  %v885_v35 = vunpack.c.0.s8 %v669_v2 }
  0x55   :  { %v390_v31 = vmul.f32 1.1111112, %v374_v33  ;;  %v391_v32 = vmul.f32 1.1111112, %v375_v34  ;;  %v392_v45 = vmul.f32 1.1111112, %v376_v39 }
  0x56   :  { %v393_v46 = vmul.f32 1.1111112, %v377_v40  ;;  %v429_v36 = vsub.s32 %v885_v35, %v671_v4  ;;  %v394_v43 = vmul.f32 1.1111112, %v378_v37  ;;  %v395_v44 = vmul.f32 1.1111112, %v379_v38 }
  0x57   :  { %v396_v47 = vmul.f32 1.1111112, %v380_v19  ;;  %v420_v48 = vcombine.low %v388_v29, %v389_v30  ;;  %v397_v49 = vmul.f32 1.1111112, %v381_v41  ;;  %v398_v50 = vmul.f32 1.1111112, %v382_v42 }
  0x58   :  { %v399_v51 = vmul.f32 1.1111112, %v383_v20  ;;  %v421_v52 = vcombine.low %v390_v31, %v391_v32  ;;  %v400_v53 = vmul.f32 1.1111112, %v384_v21  ;;  %v401_v54 = vmul.f32 1.1111112, %v385_v22 }
  0x59   :  { %v402_v55 = vmul.f32 1.1111112, %v386_v27  ;;  %v422_v56 = vcombine.low %v392_v45, %v393_v46  ;;  %v403_v57 = vmul.f32 1.1111112, %v387_v28  ;;  %v423_v58 = vcombine.low %v394_v43, %v395_v44 }
  0x5a   :  { %v430_v6 = vrot.slane %v420_v48, %v429_v36  ;;  %v437_v26 = vrot.slane %v421_v52, %v429_v36  ;;  %v469_v60 = vcombine.low %v396_v47, %v397_v49  ;;  %v470_v2 = vcombine.low %v398_v50, %v399_v51 }
  0x5b   :  { %v444_v59 = vrot.slane %v422_v56, %v429_v36  ;;  %v471_v4 = vcombine.low %v400_v53, %v401_v54  ;;  %v451_v61 = vrot.slane %v423_v58, %v429_v36  ;;  %v472_v63 = vcombine.low %v402_v55, %v403_v57 }
  0x5c   :  { %v452_v62 = vcombine.low %v430_v6, %v437_v26  ;;  %v479_v0 = vrot.slane %v469_v60, %v429_v36  ;;  %v486_v1 = vrot.slane %v470_v2, %v429_v36 }
  0x5d   :  { %v493_v3 = vrot.slane %v471_v4, %v429_v36  ;;  %v453_v7 = vcombine.low %v444_v59, %v451_v61  ;;  %v500_v9 = vrot.slane %v472_v63, %v429_v36 }
  0x5e   :  { %v460_v8 = vrot.slane %v452_v62, %v429_v36  ;;  %v501_v10 = vcombine.low %v479_v0, %v486_v1 }
  0x5f   :  { %v467_v11 = vrot.slane %v453_v7, %v429_v36  ;;  %v502_v12 = vcombine.low %v493_v3, %v500_v9 }
  0x60   :  { %v509_v18 = vrot.slane %v501_v10, %v429_v36 }
  0x61   :  { %v468_v13 = vcombine.low %v460_v8, %v467_v11  ;;  %v516_v14 = vrot.slane %v502_v12, %v429_v36 }
  0x63   :  { %v517_v15 = vcombine.low %v509_v18, %v516_v14  ;;  %520 = vst [vmem:[#allocation7] sm:$0xff] %v468_v13 }
  0x65   :  { %521 = vst [vmem:[#allocation7 + $0x8] sm:$0xff] %v517_v15 }
  0x66   :  { %621 = shalt.err (!%p618_p12)
}
  0x67   :  { %s622_s27 = scalar_lea.hbm %s850_s2, 256 }
  0x68   :  { %p623_p13 = scmp.ne.s32.totalorder %s850_s2, %s622_s27  ;;  %p626_p0 = scmp.lt.u32.totalorder %s622_s27, %s850_s2 }
  0x6a   :  { %p628_p1 = pnand %p626_p0, %p623_p13 }
  0x6c   :  { %631 = shalt.err (!%p628_p1)
}
  0x6d   :  { %531 = dma.vmem_to_hbm [thread:$0]  %s529_s1, 256, %s850_s2, [#allocation6]  }
  0x6e   :  { %634 = dma.done.wait [#allocation6], 256  }
  0x6f   :  { %635 = vsyncadd [#allocation6], 4294967040 }
  0x70   :  { %535 = vsyncpa [#allocation5], 1 }
  0x71   :  { %536 = vsyncpa [#allocation6], 1 }

</bundles_post_ra>
